<compile_context>
chip_gen: v6e
topology: v6e:2x2x1
jax: 0.10.0
libtpu: 0.0.40
codegen_flags: <defaults>
</compile_context>

<pallas_src>
import functools

import jax
import jax.numpy as jnp
from jax.experimental import pallas as pl
from jax.experimental.pallas import tpu as pltpu


def _joint_kernel(
    bx_ref,       # [R, N]       flattened batch_x rows (R = B*L)
    timex_ref,    # [R, d_inp]   raw time features
    eps_ref,      # [R, D]       N(0,1) noise for reparameterization of z
    w_tfe_ref,    # [d_inp, D]   TimeFeatureEmbedding (bias-free)
    w_enc_ref,    # [N, D]       synthetic mixing_model.Encoder
    w_tv_ref,     # [D, 2D]      fused [mu_t | var_t]
    w_ivz_ref,    # [D, 3D]      fused [inference | mu_z | var_z]
    w_zth_ref,    # [D, 2D]      fused [mu_z_t_hat | var_z_t_hat]
    w_dn_ref,     # [D, N]       synthetic Decoder feature projection
    w_hl_ref,     # [H, L]       synthetic Decoder time map
    bias_ref,     # [8, >=128]   packed biases
    slab_ref,     # [R, 6D]      out: [mu_t|var_t|mu_zth|var_zth|mu_z|var_z]
    fy_ref,       # [B, H, N]    out: forecast_y
):
    f32 = jnp.float32
    D = w_tv_ref.shape[0]
    N = w_enc_ref.shape[0]
    H, L = w_hl_ref.shape
    B = fy_ref.shape[0]

    bias = bias_ref[...]
    b_enc = bias[0:1, :D]          # [1, D]
    b_tv = bias[1:2, :2 * D]       # [1, 2D]
    b_ivz = bias[2:3, :3 * D]      # [1, 3D]
    b_zth = bias[3:4, :2 * D]      # [1, 2D]
    b_dn = bias[4:5, :N]           # [1, N]

    bx = bx_ref[...]
    timex = timex_ref[...]
    eps = eps_ref[...]

    def mm(x, w_ref, b):
        return jnp.dot(x, w_ref[...], preferred_element_type=f32) + b

    # TimeFeatureEmbedding: Linear(d_inp, d_model, bias=False)
    tx = jnp.dot(timex, w_tfe_ref[...], preferred_element_type=f32)   # [R, D]

    # synthetic mixing_model.Encoder
    enc_out = mm(bx, w_enc_ref, b_enc)                                # [R, D]

    # fused mu_t_layer | var_t_layer
    tv = mm(tx, w_tv_ref, b_tv)                                       # [R, 2D]
    # z_t = reparameterization(mu_t, var_t) is dead code in the original
    # forward (never consumed) -> skipped.

    # gate_layer_1(time_x) * enc_out
    gated = jax.nn.sigmoid(tx) * enc_out                              # [R, D]

    # fused inference_layer | mu_z_layer | var_z_layer
    ivz = mm(gated, w_ivz_ref, b_ivz)                                 # [R, 3D]
    z_t_hat = ivz[:, :D]
    mu_z = ivz[:, D:2 * D]
    var_z = ivz[:, 2 * D:]

    # fused mu_z_t_hat_layer | var_z_t_hat_layer
    zth = mm(z_t_hat, w_zth_ref, b_zth)                               # [R, 2D]

    # reparameterization: std = exp(0.5 * var) (var treated as log-variance,
    # matching the PyTorch reference exactly)
    z = eps * jnp.exp(0.5 * var_z) + mu_z                             # [R, D]

    # lane-dense output slab: [mu_t | var_t | mu_zth | var_zth | mu_z | var_z]
    slab_ref[...] = jnp.concatenate([tv, zth, ivz[:, D:]], axis=-1)   # [R, 6D]

    # synthetic mixing_model.Decoder: feature proj D->N then time map L->H,
    # applied per batch element (B is tiny -> static unroll).
    feat = mm(z, w_dn_ref, b_dn)                                      # [R, N]
    w_hl = w_hl_ref[...]
    for b in range(B):
        feat_b = feat[b * L:(b + 1) * L, :]                           # [L, N]
        fy_ref[b] = jnp.dot(w_hl, feat_b, preferred_element_type=f32)  # [H, N]


def _full_spec(shape):
    zeros = (0,) * len(shape)
    return pl.BlockSpec(shape, lambda i: zeros)


@functools.partial(jax.jit, static_argnames=("is_eval",))
def jointpgm_mixing_forward(batch_x, time_x, dec_inp, packed, noise, is_eval=False):
    """batch_x: [B, L, N], time_x: [B, L, d_inp], noise: [B, L, D]."""
    del dec_inp, is_eval  # TODO(synk): consumed only by the external mixing_model
    f32 = jnp.float32
    B, L, N = batch_x.shape
    D = packed["w_tv"].shape[0]
    H = packed["w_hl"].shape[0]
    d_inp = time_x.shape[-1]
    R = B * L

    # Flatten batch into rows (contiguous reshape, free). astype is a no-op
    # when inputs are already f32; kept only as a dtype guard.
    bx = batch_x.reshape(R, N).astype(f32)
    timex = time_x.reshape(R, d_inp).astype(f32)
    eps = noise.reshape(R, D).astype(f32)

    in_specs = [
        _full_spec((R, N)),
        _full_spec((R, d_inp)),
        _full_spec((R, D)),
        _full_spec((d_inp, D)),
        _full_spec((N, D)),
        _full_spec((D, 2 * D)),
        _full_spec((D, 3 * D)),
        _full_spec((D, 2 * D)),
        _full_spec((D, N)),
        _full_spec((H, L)),
        _full_spec(packed["bias"].shape),
    ]
    out_specs = [_full_spec((R, 6 * D)), _full_spec((B, H, N))]
    out_shape = [
        jax.ShapeDtypeStruct((R, 6 * D), f32),
        jax.ShapeDtypeStruct((B, H, N), f32),   # tiny; single masked store is fine
    ]

    slab, forecast_y = pl.pallas_call(
        _joint_kernel,
        grid=(1,),
        in_specs=in_specs,
        out_specs=out_specs,
        out_shape=out_shape,
        compiler_params=pltpu.CompilerParams(dimension_semantics=("arbitrary",)),
    )(
        bx, timex, eps,
        packed["w_tfe"], packed["w_enc"],
        packed["w_tv"], packed["w_ivz"], packed["w_zth"],
        packed["w_dn"], packed["w_hl"], packed["bias"],
    )

    slab = slab.reshape(B, L, 6 * D)
    mu_t = slab[..., 0 * D:1 * D]
    var_t = slab[..., 1 * D:2 * D]
    mu_zth = slab[..., 2 * D:3 * D]
    var_zth = slab[..., 3 * D:4 * D]
    mu_z = slab[..., 4 * D:5 * D]
    var_z = slab[..., 5 * D:6 * D]
    return forecast_y, mu_t, var_t, mu_zth, var_zth, mu_z, var_z


def init_params(key, L, H, N, D, d_inp):
    """Per-layer params matching the PyTorch layers (weights stored [in, out])."""
    keys = iter(jax.random.split(key, 32))

    def lin_p(fan_in, fan_out):
        kw, kb = jax.random.split(next(keys))
        w = jax.random.normal(kw, (fan_in, fan_out), jnp.float32) * (1.0 / float(fan_in) ** 0.5)
        b = jax.random.normal(kb, (fan_out,), jnp.float32) * 0.01
        return w, b

    p = {}
    p["w_tfe"] = jax.random.normal(next(keys), (d_inp, D), jnp.float32) * (1.0 / float(d_inp) ** 0.5)
    p["w_enc"], p["b_enc"] = lin_p(N, D)          # synthetic Encoder
    for name in ("mu_t", "var_t", "inf", "mu_zth", "var_zth", "mu_z", "var_z"):
        p[f"w_{name}"], p[f"b_{name}"] = lin_p(D, D)
    p["w_dec_dn"], p["b_dec_dn"] = lin_p(D, N)    # synthetic Decoder: D -> N
    p["w_dec_hl"] = jax.random.normal(next(keys), (H, L), jnp.float32) * (1.0 / float(L) ** 0.5)
    return p


def pack_params(p):
    """One-time packing: fuse same-input weights, pack all biases into one tile."""
    f32 = jnp.float32
    D = p["w_mu_t"].shape[0]
    N = p["w_enc"].shape[0]

    lane_w = max(128, -(-(3 * D) // 128) * 128, -(-N // 128) * 128)
    flat = lambda b: jnp.asarray(b, f32).reshape(-1)
    bias = jnp.zeros((8, lane_w), f32)
    bias = bias.at[0, :D].set(flat(p["b_enc"]))
    bias = bias.at[1, :2 * D].set(jnp.concatenate([flat(p["b_mu_t"]), flat(p["b_var_t"])]))
    bias = bias.at[2, :3 * D].set(
        jnp.concatenate([flat(p["b_inf"]), flat(p["b_mu_z"]), flat(p["b_var_z"])]))
    bias = bias.at[3, :2 * D].set(jnp.concatenate([flat(p["b_mu_zth"]), flat(p["b_var_zth"])]))
    bias = bias.at[4, :N].set(flat(p["b_dec_dn"]))

    return {
        "w_tfe": jnp.asarray(p["w_tfe"], f32),
        "w_enc": jnp.asarray(p["w_enc"], f32),
        "w_tv": jnp.concatenate([p["w_mu_t"], p["w_var_t"]], axis=1).astype(f32),
        "w_ivz": jnp.concatenate([p["w_inf"], p["w_mu_z"], p["w_var_z"]], axis=1).astype(f32),
        "w_zth": jnp.concatenate([p["w_mu_zth"], p["w_var_zth"]], axis=1).astype(f32),
        "w_dn": jnp.asarray(p["w_dec_dn"], f32),
        "w_hl": jnp.asarray(p["w_dec_hl"], f32),
        "bias": bias,
    }


if __name__ == "__main__":
    # args: N_series=8, batch_size=2, seq_len=16, pred_len=8, label_len=4,
    #       d_model=32, time_features='h' -> d_inp=7, temporal_index=False
    B, L, H, N, D, d_inp, label_len = 2, 16, 8, 8, 32, 7, 4

    key = jax.random.PRNGKey(0)
    k_bx, k_tx, k_dec, k_eps, k_par = jax.random.split(key, 5)

    batch_x = jax.random.normal(k_bx, (B, L, N), jnp.float32)
    time_x = jax.random.normal(k_tx, (B, L, d_inp), jnp.float32)
    dec_inp = jax.random.normal(k_dec, (B, label_len + H, N), jnp.float32)
    noise = jax.random.normal(k_eps, (B, L, D), jnp.float32)  # torch.randn_like replacement

    params = init_params(k_par, L, H, N, D, d_inp)
    packed = pack_params(params)  # weight fusion / bias packing done once, off the hot path

    outs = jointpgm_mixing_forward(batch_x, time_x, dec_inp, packed, noise, is_eval=True)
    jax.block_until_ready(outs)

    forecast_y, mu_t, var_t, mu_zth, var_zth, mu_z, var_z = outs
    assert forecast_y.shape == (B, H, N)
    assert all(o.shape == (B, L, D) for o in (mu_t, var_t, mu_zth, var_zth, mu_z, var_z))
    print("KERNEL_OK")
</pallas_src>

<mosaic_0001>
module attributes {stable_mosaic.version = 11 : i64} {
  func.func @_joint_kernel(%arg0: i32, %arg1: memref<32x8xf32, #tpu.memory_space<vmem>>, %arg2: memref<32x7xf32, #tpu.memory_space<vmem>>, %arg3: memref<32x32xf32, #tpu.memory_space<vmem>>, %arg4: memref<7x32xf32, #tpu.memory_space<vmem>>, %arg5: memref<8x32xf32, #tpu.memory_space<vmem>>, %arg6: memref<32x64xf32, #tpu.memory_space<vmem>>, %arg7: memref<32x96xf32, #tpu.memory_space<vmem>>, %arg8: memref<32x64xf32, #tpu.memory_space<vmem>>, %arg9: memref<32x8xf32, #tpu.memory_space<vmem>>, %arg10: memref<8x16xf32, #tpu.memory_space<vmem>>, %arg11: memref<8x128xf32, #tpu.memory_space<vmem>>, %arg12: memref<32x192xf32, #tpu.memory_space<vmem>>, %arg13: memref<2x8x8xf32, #tpu.memory_space<vmem>>) attributes {dimension_semantics = [#tpu.dimension_semantics<arbitrary>], iteration_bounds = array<i64: 1>, scalar_prefetch = 0 : i64, scratch_operands = 0 : i64, tpu.core_type = #tpu.core_type<tc>, window_params = [{pipeline_mode = #tpu.pipeline_mode<synchronous>, transform_indices = @transform_0, window_bounds = array<i64: 32, 8>}, {pipeline_mode = #tpu.pipeline_mode<synchronous>, transform_indices = @transform_1, window_bounds = array<i64: 32, 7>}, {pipeline_mode = #tpu.pipeline_mode<synchronous>, transform_indices = @transform_2, window_bounds = array<i64: 32, 32>}, {pipeline_mode = #tpu.pipeline_mode<synchronous>, transform_indices = @transform_3, window_bounds = array<i64: 7, 32>}, {pipeline_mode = #tpu.pipeline_mode<synchronous>, transform_indices = @transform_4, window_bounds = array<i64: 8, 32>}, {pipeline_mode = #tpu.pipeline_mode<synchronous>, transform_indices = @transform_5, window_bounds = array<i64: 32, 64>}, {pipeline_mode = #tpu.pipeline_mode<synchronous>, transform_indices = @transform_6, window_bounds = array<i64: 32, 96>}, {pipeline_mode = #tpu.pipeline_mode<synchronous>, transform_indices = @transform_7, window_bounds = array<i64: 32, 64>}, {pipeline_mode = #tpu.pipeline_mode<synchronous>, transform_indices = @transform_8, window_bounds = array<i64: 32, 8>}, {pipeline_mode = #tpu.pipeline_mode<synchronous>, transform_indices = @transform_9, window_bounds = array<i64: 8, 16>}, {pipeline_mode = #tpu.pipeline_mode<synchronous>, transform_indices = @transform_10, window_bounds = array<i64: 8, 128>}, {pipeline_mode = #tpu.pipeline_mode<synchronous>, transform_indices = @transform_11, window_bounds = array<i64: 32, 192>}, {pipeline_mode = #tpu.pipeline_mode<synchronous>, transform_indices = @transform_12, window_bounds = array<i64: 2, 8, 8>}]} {
    %c0 = arith.constant 0 : index
    %c0_0 = arith.constant 0 : index
    %0 = vector.load %arg11[%c0, %c0_0] : memref<8x128xf32, #tpu.memory_space<vmem>>, vector<8x128xf32>
    %1 = vector.extract_strided_slice %0 {offsets = [0, 0], sizes = [1, 32], strides = [1, 1]} : vector<8x128xf32> to vector<1x32xf32>
    %2 = vector.extract_strided_slice %0 {offsets = [1, 0], sizes = [1, 64], strides = [1, 1]} : vector<8x128xf32> to vector<1x64xf32>
    %3 = vector.extract_strided_slice %0 {offsets = [2, 0], sizes = [1, 96], strides = [1, 1]} : vector<8x128xf32> to vector<1x96xf32>
    %4 = vector.extract_strided_slice %0 {offsets = [3, 0], sizes = [1, 64], strides = [1, 1]} : vector<8x128xf32> to vector<1x64xf32>
    %5 = vector.extract_strided_slice %0 {offsets = [4, 0], sizes = [1, 8], strides = [1, 1]} : vector<8x128xf32> to vector<1x8xf32>
    %c0_1 = arith.constant 0 : index
    %c0_2 = arith.constant 0 : index
    %6 = vector.load %arg1[%c0_1, %c0_2] : memref<32x8xf32, #tpu.memory_space<vmem>>, vector<32x8xf32>
    %c0_3 = arith.constant 0 : index
    %c0_4 = arith.constant 0 : index
    %7 = vector.load %arg2[%c0_3, %c0_4] : memref<32x7xf32, #tpu.memory_space<vmem>>, vector<32x7xf32>
    %c0_5 = arith.constant 0 : index
    %c0_6 = arith.constant 0 : index
    %8 = vector.load %arg3[%c0_5, %c0_6] : memref<32x32xf32, #tpu.memory_space<vmem>>, vector<32x32xf32>
    %c0_7 = arith.constant 0 : index
    %c0_8 = arith.constant 0 : index
    %9 = vector.load %arg4[%c0_7, %c0_8] : memref<7x32xf32, #tpu.memory_space<vmem>>, vector<7x32xf32>
    %cst = arith.constant dense<0.000000e+00> : vector<32x32xf32>
    %10 = tpu.matmul %7, %9, %cst {dimension_numbers = #tpu.dot_dimension_numbers<[1], [0], [0], [1], [0, 0, 1, 1], [], []>} : vector<32x7xf32>, vector<7x32xf32>, vector<32x32xf32> -> vector<32x32xf32>
    %c0_9 = arith.constant 0 : index
    %c0_10 = arith.constant 0 : index
    %11 = vector.load %arg5[%c0_9, %c0_10] : memref<8x32xf32, #tpu.memory_space<vmem>>, vector<8x32xf32>
    %cst_11 = arith.constant dense<0.000000e+00> : vector<32x32xf32>
    %12 = tpu.matmul %6, %11, %cst_11 {dimension_numbers = #tpu.dot_dimension_numbers<[1], [0], [0], [1], [0, 0, 1, 1], [], []>} : vector<32x8xf32>, vector<8x32xf32>, vector<32x32xf32> -> vector<32x32xf32>
    %13 = vector.broadcast %1 : vector<1x32xf32> to vector<32x32xf32>
    %14 = arith.addf %12, %13 : vector<32x32xf32>
    %c0_12 = arith.constant 0 : index
    %c0_13 = arith.constant 0 : index
    %15 = vector.load %arg6[%c0_12, %c0_13] : memref<32x64xf32, #tpu.memory_space<vmem>>, vector<32x64xf32>
    %cst_14 = arith.constant dense<0.000000e+00> : vector<32x64xf32>
    %16 = tpu.matmul %10, %15, %cst_14 {dimension_numbers = #tpu.dot_dimension_numbers<[1], [0], [0], [1], [0, 0, 1, 1], [], []>} : vector<32x32xf32>, vector<32x64xf32>, vector<32x64xf32> -> vector<32x64xf32>
    %17 = vector.broadcast %2 : vector<1x64xf32> to vector<32x64xf32>
    %18 = arith.addf %16, %17 : vector<32x64xf32>
    %19 = arith.negf %10 : vector<32x32xf32>
    %20 = math.exp %19 : vector<32x32xf32>
    %cst_15 = arith.constant 1.000000e+00 : f32
    %21 = vector.broadcast %cst_15 : f32 to vector<32x32xf32>
    %22 = arith.addf %21, %20 : vector<32x32xf32>
    %23 = arith.divf %21, %22 : vector<32x32xf32>
    %24 = arith.mulf %23, %14 : vector<32x32xf32>
    %c0_16 = arith.constant 0 : index
    %c0_17 = arith.constant 0 : index
    %25 = vector.load %arg7[%c0_16, %c0_17] : memref<32x96xf32, #tpu.memory_space<vmem>>, vector<32x96xf32>
    %cst_18 = arith.constant dense<0.000000e+00> : vector<32x96xf32>
    %26 = tpu.matmul %24, %25, %cst_18 {dimension_numbers = #tpu.dot_dimension_numbers<[1], [0], [0], [1], [0, 0, 1, 1], [], []>} : vector<32x32xf32>, vector<32x96xf32>, vector<32x96xf32> -> vector<32x96xf32>
    %27 = vector.broadcast %3 : vector<1x96xf32> to vector<32x96xf32>
    %28 = arith.addf %26, %27 : vector<32x96xf32>
    %29 = vector.extract_strided_slice %28 {offsets = [0, 0], sizes = [32, 32], strides = [1, 1]} : vector<32x96xf32> to vector<32x32xf32>
    %30 = vector.extract_strided_slice %28 {offsets = [0, 32], sizes = [32, 32], strides = [1, 1]} : vector<32x96xf32> to vector<32x32xf32>
    %31 = vector.extract_strided_slice %28 {offsets = [0, 64], sizes = [32, 32], strides = [1, 1]} : vector<32x96xf32> to vector<32x32xf32>
    %c0_19 = arith.constant 0 : index
    %c0_20 = arith.constant 0 : index
    %32 = vector.load %arg8[%c0_19, %c0_20] : memref<32x64xf32, #tpu.memory_space<vmem>>, vector<32x64xf32>
    %cst_21 = arith.constant dense<0.000000e+00> : vector<32x64xf32>
    %33 = tpu.matmul %29, %32, %cst_21 {dimension_numbers = #tpu.dot_dimension_numbers<[1], [0], [0], [1], [0, 0, 1, 1], [], []>} : vector<32x32xf32>, vector<32x64xf32>, vector<32x64xf32> -> vector<32x64xf32>
    %34 = vector.broadcast %4 : vector<1x64xf32> to vector<32x64xf32>
    %35 = arith.addf %33, %34 : vector<32x64xf32>
    %cst_22 = arith.constant 5.000000e-01 : f32
    %36 = vector.broadcast %cst_22 : f32 to vector<32x32xf32>
    %37 = arith.mulf %36, %31 : vector<32x32xf32>
    %38 = math.exp %37 : vector<32x32xf32>
    %39 = arith.mulf %8, %38 : vector<32x32xf32>
    %40 = arith.addf %39, %30 : vector<32x32xf32>
    %41 = vector.extract_strided_slice %28 {offsets = [0, 32], sizes = [32, 64], strides = [1, 1]} : vector<32x96xf32> to vector<32x64xf32>
    %42 = tpu.concatenate %18, %35, %41 in 1 : vector<32x64xf32>, vector<32x64xf32>, vector<32x64xf32> -> vector<32x192xf32>
    %c0_23 = arith.constant 0 : index
    %c0_24 = arith.constant 0 : index
    %43 = vector.load %arg12[%c0_23, %c0_24] : memref<32x192xf32, #tpu.memory_space<vmem>>, vector<32x192xf32>
    tpu.vector_store %arg12[%c0_23, %c0_24], %42 {strides = array<i32>} : memref<32x192xf32, #tpu.memory_space<vmem>>, vector<32x192xf32>,
    %c0_25 = arith.constant 0 : index
    %c0_26 = arith.constant 0 : index
    %44 = vector.load %arg9[%c0_25, %c0_26] : memref<32x8xf32, #tpu.memory_space<vmem>>, vector<32x8xf32>
    %cst_27 = arith.constant dense<0.000000e+00> : vector<32x8xf32>
    %45 = tpu.matmul %40, %44, %cst_27 {dimension_numbers = #tpu.dot_dimension_numbers<[1], [0], [0], [1], [0, 0, 1, 1], [], []>} : vector<32x32xf32>, vector<32x8xf32>, vector<32x8xf32> -> vector<32x8xf32>
    %46 = vector.broadcast %5 : vector<1x8xf32> to vector<32x8xf32>
    %47 = arith.addf %45, %46 : vector<32x8xf32>
    %c0_28 = arith.constant 0 : index
    %c0_29 = arith.constant 0 : index
    %48 = vector.load %arg10[%c0_28, %c0_29] : memref<8x16xf32, #tpu.memory_space<vmem>>, vector<8x16xf32>
    %49 = vector.extract_strided_slice %47 {offsets = [0, 0], sizes = [16, 8], strides = [1, 1]} : vector<32x8xf32> to vector<16x8xf32>
    %cst_30 = arith.constant dense<0.000000e+00> : vector<8x8xf32>
    %50 = tpu.matmul %48, %49, %cst_30 {dimension_numbers = #tpu.dot_dimension_numbers<[1], [0], [0], [1], [0, 0, 1, 1], [], []>} : vector<8x16xf32>, vector<16x8xf32>, vector<8x8xf32> -> vector<8x8xf32>
    %c0_31 = arith.constant 0 : index
    %c0_32 = arith.constant 0 : index
    %c0_33 = arith.constant 0 : index
    %51 = vector.load %arg13[%c0_31, %c0_32, %c0_33] : memref<2x8x8xf32, #tpu.memory_space<vmem>>, vector<1x8x8xf32>
    %52 = vector.shape_cast %51 : vector<1x8x8xf32> to vector<8x8xf32>
    %53 = vector.shape_cast %50 : vector<8x8xf32> to vector<1x8x8xf32>
    tpu.vector_store %arg13[%c0_31, %c0_32, %c0_33], %53 {strides = array<i32>} : memref<2x8x8xf32, #tpu.memory_space<vmem>>, vector<1x8x8xf32>,
    %54 = vector.extract_strided_slice %47 {offsets = [16, 0], sizes = [16, 8], strides = [1, 1]} : vector<32x8xf32> to vector<16x8xf32>
    %cst_34 = arith.constant dense<0.000000e+00> : vector<8x8xf32>
    %55 = tpu.matmul %48, %54, %cst_34 {dimension_numbers = #tpu.dot_dimension_numbers<[1], [0], [0], [1], [0, 0, 1, 1], [], []>} : vector<8x16xf32>, vector<16x8xf32>, vector<8x8xf32> -> vector<8x8xf32>
    %c1 = arith.constant 1 : index
    %c0_35 = arith.constant 0 : index
    %c0_36 = arith.constant 0 : index
    %56 = vector.load %arg13[%c1, %c0_35, %c0_36] : memref<2x8x8xf32, #tpu.memory_space<vmem>>, vector<1x8x8xf32>
    %57 = vector.shape_cast %56 : vector<1x8x8xf32> to vector<8x8xf32>
    %58 = vector.shape_cast %55 : vector<8x8xf32> to vector<1x8x8xf32>
    tpu.vector_store %arg13[%c1, %c0_35, %c0_36], %58 {strides = array<i32>} : memref<2x8x8xf32, #tpu.memory_space<vmem>>, vector<1x8x8xf32>,
    return
  }
  func.func @transform_0(%arg0: i32) -> (i32, i32) {
    %c0_i32 = arith.constant 0 : i32
    %c0_i32_0 = arith.constant 0 : i32
    %c0_i32_1 = arith.constant 0 : i32
    return %c0_i32, %c0_i32_0 : i32, i32
  }
  func.func @transform_1(%arg0: i32) -> (i32, i32) {
    %c0_i32 = arith.constant 0 : i32
    %c0_i32_0 = arith.constant 0 : i32
    %c0_i32_1 = arith.constant 0 : i32
    return %c0_i32, %c0_i32_0 : i32, i32
  }
  func.func @transform_2(%arg0: i32) -> (i32, i32) {
    %c0_i32 = arith.constant 0 : i32
    %c0_i32_0 = arith.constant 0 : i32
    %c0_i32_1 = arith.constant 0 : i32
    return %c0_i32, %c0_i32_0 : i32, i32
  }
  func.func @transform_3(%arg0: i32) -> (i32, i32) {
    %c0_i32 = arith.constant 0 : i32
    %c0_i32_0 = arith.constant 0 : i32
    %c0_i32_1 = arith.constant 0 : i32
    return %c0_i32, %c0_i32_0 : i32, i32
  }
  func.func @transform_4(%arg0: i32) -> (i32, i32) {
    %c0_i32 = arith.constant 0 : i32
    %c0_i32_0 = arith.constant 0 : i32
    %c0_i32_1 = arith.constant 0 : i32
    return %c0_i32, %c0_i32_0 : i32, i32
  }
  func.func @transform_5(%arg0: i32) -> (i32, i32) {
    %c0_i32 = arith.constant 0 : i32
    %c0_i32_0 = arith.constant 0 : i32
    %c0_i32_1 = arith.constant 0 : i32
    return %c0_i32, %c0_i32_0 : i32, i32
  }
  func.func @transform_6(%arg0: i32) -> (i32, i32) {
    %c0_i32 = arith.constant 0 : i32
    %c0_i32_0 = arith.constant 0 : i32
    %c0_i32_1 = arith.constant 0 : i32
    return %c0_i32, %c0_i32_0 : i32, i32
  }
  func.func @transform_7(%arg0: i32) -> (i32, i32) {
    %c0_i32 = arith.constant 0 : i32
    %c0_i32_0 = arith.constant 0 : i32
    %c0_i32_1 = arith.constant 0 : i32
    return %c0_i32, %c0_i32_0 : i32, i32
  }
  func.func @transform_8(%arg0: i32) -> (i32, i32) {
    %c0_i32 = arith.constant 0 : i32
    %c0_i32_0 = arith.constant 0 : i32
    %c0_i32_1 = arith.constant 0 : i32
    return %c0_i32, %c0_i32_0 : i32, i32
  }
  func.func @transform_9(%arg0: i32) -> (i32, i32) {
    %c0_i32 = arith.constant 0 : i32
    %c0_i32_0 = arith.constant 0 : i32
    %c0_i32_1 = arith.constant 0 : i32
    return %c0_i32, %c0_i32_0 : i32, i32
  }
  func.func @transform_10(%arg0: i32) -> (i32, i32) {
    %c0_i32 = arith.constant 0 : i32
    %c0_i32_0 = arith.constant 0 : i32
    %c0_i32_1 = arith.constant 0 : i32
    return %c0_i32, %c0_i32_0 : i32, i32
  }
  func.func @transform_11(%arg0: i32) -> (i32, i32) {
    %c0_i32 = arith.constant 0 : i32
    %c0_i32_0 = arith.constant 0 : i32
    %c0_i32_1 = arith.constant 0 : i32
    return %c0_i32, %c0_i32_0 : i32, i32
  }
  func.func @transform_12(%arg0: i32) -> (i32, i32, i32) {
    %c0_i32 = arith.constant 0 : i32
    %c0_i32_0 = arith.constant 0 : i32
    %c0_i32_1 = arith.constant 0 : i32
    %c0_i32_2 = arith.constant 0 : i32
    return %c0_i32, %c0_i32_0, %c0_i32_1 : i32, i32, i32
  }
}

</mosaic_0001>

<bundles_post_ra>
// kernel: jointpgm_mixing_forward.1
= control target key start
LH: loop header
LB: loop body
LE: loop exit
PB: predicated region body
PF: predicated region fallthrough
CT: control target
= control target key end

     0   :  { %18 = vsyncpa [#allocation3], 0  ;;  %s1534_s0 = inlined_call_operand.vmem [shape: f32[32,8], index: 0, kind: input, shape index: {}]   ;;  %s1535_s1 = inlined_call_operand.vmem [shape: f32[32,7], index: 1, kind: input, shape index: {}]   ;;  %s1536_s2 = inlined_call_operand.vmem [shape: f32[32,32], index: 2, kind: input, shape index: {}]   ;;  %s1537_s3 = inlined_call_operand.vmem [shape: f32[7,32], index: 3, kind: input, shape index: {}]   ;;  %s1538_s4 = inlined_call_operand.hbm [shape: f32[8,32], index: 4, kind: input, shape index: {}]   ;;  %s1539_s5 = inlined_call_operand.vmem [shape: f32[32,64], index: 5, kind: input, shape index: {}]   ;;  %s1540_s6 = inlined_call_operand.vmem [shape: f32[32,96], index: 6, kind: input, shape index: {}]   ;;  %s1541_s7 = inlined_call_operand.vmem [shape: f32[32,64], index: 7, kind: input, shape index: {}]   ;;  %s1542_s8 = inlined_call_operand.vmem [shape: f32[32,8], index: 8, kind: input, shape index: {}]   ;;  %s1543_s9 = inlined_call_operand.hbm [shape: f32[8,16], index: 9, kind: input, shape index: {}]   ;;  %s1544_s10 = inlined_call_operand.hbm [shape: f32[8,128], index: 10, kind: input, shape index: {}]   ;;  %s1545_s11 = inlined_call_operand.vmem [shape: f32[32,192], index: 11, kind: output, shape index: {0}]   ;;  %s1546_s12 = inlined_call_operand.hbm [shape: f32[2,8,8], index: 12, kind: output, shape index: {1}]  }
   0x1   :  { %19 = vsyncpa [#allocation6], 0 }
   0x2   :  { %20 = vsyncpa [#allocation4], 0  ;;  %s1276_s21 = smov [#allocation5]   ;;  %s1277_s23 = smov [#allocation2]  }
   0x3   :  { %s53_s22 = sshll.u32 %s1276_s21, 4  ;;  %s35_s24 = sshll.u32 %s1277_s23, 4  ;;  %s54_s22 = int_to_ptr.vmem [resolvable:$true] %s53_s22  ;;  %s36_s24 = int_to_ptr.vmem [resolvable:$true] %s35_s24 }
   0x4   :  { %s1198_s25 = scalar_lea.vmem %s54_s22, 128  ;;  %p1203_p1 = scmp.lt.s32.totalorder %s54_s22, %s54_s22 }
   0x5   :  { %p1199_p0 = scmp.ne.s32.totalorder %s54_s22, %s1198_s25  ;;  %p1204_p2 = scmp.lt.s32.totalorder %s1198_s25, %s1198_s25 }
   0x7   :  { %p1205_p3 = por %p1204_p2, %p1203_p1 }
   0x9   :  { %p1206_p4 = pnand %p1205_p3, %p1199_p0 }
   0xb   :  { %1209 = shalt.err (!%p1206_p4)
}
   0xc   :  { %56 = dma.hbm_to_vmem [thread:$0]  %s1543_s9, 128, %s54_s22, [#allocation6]  }
   0xd   :  { %s1218_s28 = scalar_lea.vmem %s36_s24, 128  ;;  %p1223_p6 = scmp.lt.s32.totalorder %s36_s24, %s36_s24 }
   0xe   :  { %p1219_p5 = scmp.ne.s32.totalorder %s36_s24, %s1218_s28  ;;  %p1224_p7 = scmp.lt.s32.totalorder %s1218_s28, %s1218_s28 }
  0x10   :  { %p1225_p8 = por %p1224_p7, %p1223_p6 }
  0x12   :  { %p1226_p9 = pnand %p1225_p8, %p1219_p5 }
  0x14   :  { %1229 = shalt.err (!%p1226_p9)
}
  0x15   :  { %38 = dma.hbm_to_vmem [thread:$0]  %s1538_s4, 128, %s36_s24, [#allocation3]  }
  0x16   :  { %s1278_s13 = smov [#allocation7]  }
  0x17   :  { %s63_s14 = sshll.u32 %s1278_s13, 4  ;;  %s64_s14 = int_to_ptr.vmem [resolvable:$true] %s63_s14 }
  0x18   :  { %s1238_s15 = scalar_lea.vmem %s64_s14, 128  ;;  %p1243_p11 = scmp.lt.s32.totalorder %s64_s14, %s64_s14 }
  0x19   :  { %p1239_p10 = scmp.ne.s32.totalorder %s64_s14, %s1238_s15  ;;  %p1244_p12 = scmp.lt.s32.totalorder %s1238_s15, %s1238_s15 }
  0x1b   :  { %p1245_p13 = por %p1244_p12, %p1243_p11 }
  0x1d   :  { %p1246_p0 = pnand %p1245_p13, %p1239_p10 }
  0x1f   :  { %1249 = shalt.err (!%p1246_p0)
}
  0x20   :  { %66 = dma.hbm_to_vmem [thread:$0]  %s1544_s10, 128, %s64_s14, [#allocation6]  }
  0x21   :  { %1270 = dma.done.wait [#allocation3], 128  }
  0x22   :  { %1271 = vsyncadd [#allocation3], 4294967168 }
  0x23   :  { %1272 = dma.done.wait [#allocation6], 256  }
  0x24   :  { %1273 = vsyncadd [#allocation6], 4294967040  ;;  %vm103_vm0 = vcmask 1046528   ;;  %vm90_vm1 = vcmask 56320   ;;  %v89_v0 = vld [vmem:[%s1537_s3] sm:$0x7f]  ;;  %v193_v27 = vlaneseq }
  0x25   :  { %v81_v1 = vld [vmem:[%s1535_s1] sm:$0xff]  ;;  %v82_v2 = vld [vmem:[%s1535_s1 + $0x8] sm:$0xff]  ;;  %1070 = vmatprep.subr.msk.mxu0 %vm103_vm0, %v89_v0  ;;  %v83_v3 = vld [vmem:[%s1535_s1 + $0x10] sm:$0xff]  ;;  %vm197_vm2 = vcmask 64512   ;;  %vm303_vm3 = vcmask 261120   ;;  %s1279_s30 = smov 96  }
  0x26   :  { %1072 = vmatprep.mubr.msk.f32.mxu0 %vm90_vm1, %v81_v1  ;;  %v192_v4 = vld [vmem:[#allocation2] sm:$0xff]  ;;  %1071 = vmatpush3.msk.msra.mxu0 %vm103_vm0, %v89_v0  ;;  %v78_v6 = vld [vmem:[%s1534_s0 + $0x8] sm:$0xff]  ;;  %v79_v7 = vld [vmem:[%s1534_s0 + $0x10] sm:$0xff]  ;;  %v1423_v32 = vshrl.u32 %v193_v27, 7  ;;  %s1280_s17 = smov 64   ;;  %vm703_vm4 = vcmask 523264  }
  0x27   :  { %1078 = vmatprep.subr.mxu1 %v192_v4  ;;  %v77_v5 = vld [vmem:[%s1534_s0] sm:$0xff]  ;;  %1073 = vmatmul.mubr.msk.f32.vlgmr.msra.gmra.mxu0 %vm90_vm1, %v82_v2  ;;  %v298_v8 = vld [vmem:[%s1539_s5 + $0x18] sm:$0xff]  ;;  %v297_v10 = vld [vmem:[%s1539_s5 + $0x10] sm:$0xff]  ;;  %vm1282_vm5 = vmmov 0   ;;  %vm822_vm6 = vcmask 130048  }
  0x28   :  { %1079 = vmatpush3.msra.mxu1 %v192_v4  ;;  %1075 = vmatprep.mubr.msk.f32.mxu0 %vm90_vm1, %v83_v3  ;;  %v84_v9 = vld [vmem:[%s1535_s1 + $0x18] sm:$0xff]  ;;  %v296_v12 = vld [vmem:[%s1539_s5 + $0x8] sm:$0xff]  ;;  %v295_v13 = vld [vmem:[%s1539_s5] sm:$0xff]  ;;  %v195_v37 = vsub.s32 0, %v1423_v32  ;;  %v435_v59 = vsub.s32 2, %v1423_v32 }
  0x29   :  { %1080 = vmatprep.mubr.msk.f32.mxu1 %vm197_vm2, %v77_v5  ;;  %1086 = vmatprep.subr.mxu0 %v298_v8  ;;  %v80_v11 = vld [vmem:[%s1534_s0 + $0x18] sm:$0xff]  ;;  %v431_v15 = vld [vmem:[%s1540_s6 + $0x10] sm:$0xff]  ;;  %v430_v16 = vld [vmem:[%s1540_s6 + $0x8] sm:$0xff] }
  0x2a   :  { %1081 = vmatmul.mubr.msk.f32.vlgmr.msra.gmra.mxu1 %vm197_vm2, %v78_v6  ;;  %1087 = vmatpush3.msra.mxu0 %v298_v8  ;;  %v432_v14 = vld [vmem:[%s1540_s6 + $0x18] sm:$0xff]  ;;  %v429_v17 = vld [vmem:[%s1540_s6] sm:$0xff]  ;;  %v1426_v38 = vld [vmem:[#allocation7] sm:$0xff] }
  0x2b   :  { %1083 = vmatprep.mubr.msk.f32.mxu1 %vm197_vm2, %v79_v7  ;;  %1076 = vmatmul.mubr.msk.f32.gmra.mxu0 %vm90_vm1, %v84_v9  ;;  %v196_v40 = vrot.slane %v1426_v38, %v195_v37  ;;  %v537_v55 = vld [vmem:[%s1541_s7 + $0x18] sm:$0xff]  ;;  %v536_v56 = vld [vmem:[%s1541_s7 + $0x10] sm:$0xff]  ;;  %v535_v57 = vld [vmem:[%s1541_s7 + $0x8] sm:$0xff]  ;;  %v436_v60 = vrot.slane %v1426_v38, %v435_v59 }
  0x2c   :  { %1088 = vmatprep.subr.mxu0 %v297_v10  ;;  %1100 = vmatprep.subr.mxu1 %v432_v14  ;;  %v534_v58 = vld [vmem:[%s1541_s7] sm:$0xff] }
  0x2d   :  { %1089 = vmatpush3.msra.mxu0 %v297_v10  ;;  %1101 = vmatpush3.msra.mxu1 %v432_v14  ;;  %v719_v10 = vld [vmem:[%s1542_s8 + $0x18] sm:$0xff] }
  0x2e   :  { %1084 = vmatmul.mubr.msk.f32.gmra.mxu1 %vm197_vm2, %v80_v11  ;;  %1090 = vmatprep.subr.mxu0 %v296_v12 }
  0x2f   :  { %1091 = vmatpush3.msra.mxu0 %v296_v12  ;;  %1102 = vmatprep.subr.mxu1 %v431_v15 }
  0x30   :  { %1092 = vmatprep.subr.mxu0 %v295_v13  ;;  %1103 = vmatpush3.msra.mxu1 %v431_v15  ;;  %v717_v15 = vld [vmem:[%s1542_s8 + $0x8] sm:$0xff] }
  0x31   :  { %1093 = vmatpush3.msra.mxu0 %v295_v13  ;;  %1104 = vmatprep.subr.mxu1 %v430_v16  ;;  %v718_v13 = vld [vmem:[%s1542_s8 + $0x10] sm:$0xff] }
  0x32   :  { %1105 = vmatpush3.msra.mxu1 %v430_v16  ;;  %1114 = vmatprep.subr.mxu0 %v537_v55  ;;  %v716_v16 = vld [vmem:[%s1542_s8] sm:$0xff] }
  0x33   :  { %1106 = vmatprep.subr.mxu1 %v429_v17 }
  0x34   :  { %1107 = vmatpush3.msra.mxu1 %v429_v17 }
  0x35   :  { %1128 = vmatprep.subr.mxu1 %v719_v10 }
  0xe7   :  { %v1074_v18 = vpop.f32.mrf.mxu0 }
  0xe8   :  { %v1005_v19 = vmul.f32 -1.442695, %v1074_v18 }
  0xe9   :  { %v173_v20 = vpop.f32.mrf.mxu0 }
  0xea   :  { %1166 = vpow2.f32 %v1005_v19  ;;  %v1004_v21 = vmul.f32 -1.442695, %v173_v20  ;;  %1094 = vmatprep.mubr.msk.f32.mxu0 %vm303_vm3, %v173_v20  ;;  %v1082_v35 = vpop.f32.mrf.mxu1 }
  0xeb   :  { %v1077_v22 = vpop.f32.mrf.mxu0  ;;  %1095 = vmatmul.mubr.msk.f32.vlgmr.msra.gmra.mxu0 %vm303_vm3, %v1074_v18  ;;  %v282_v42 = vadd.f32 %v1082_v35, %v196_v40 }
  0xec   :  { %1168 = vpow2.f32 %v1004_v21  ;;  %v1007_v23 = vmul.f32 -1.442695, %v1077_v22  ;;  %v276_v39 = vpop.f32.mrf.mxu1  ;;  %1115 = vmatpush3.msra.mxu0 %v537_v55 }
  0xed   :  { %v183_v24 = vpop.f32.mrf.mxu0  ;;  %v277_v45 = vadd.f32 %v276_v39, %v196_v40  ;;  %1116 = vmatprep.subr.mxu0 %v536_v56 }
  0xee   :  { %1170 = vpow2.f32 %v1007_v23  ;;  %v1006_v25 = vmul.f32 -1.442695, %v183_v24  ;;  %1097 = vmatprep.mubr.msk.f32.mxu0 %vm303_vm3, %v183_v24  ;;  %v1085_v41 = vpop.f32.mrf.mxu1  ;;  %1117 = vmatpush3.msra.mxu0 %v536_v56  ;;  %v86_v24 = vld [vmem:[%s1536_s2 + $0x8] sm:$0xff] }
  0xef   :  { %1098 = vmatmul.mubr.msk.f32.gmra.mxu0 %vm303_vm3, %v1077_v22  ;;  %v292_v47 = vadd.f32 %v1085_v41, %v196_v40  ;;  %1118 = vmatprep.subr.mxu0 %v535_v57 }
  0xf0   :  { %1172 = vpow2.f32 %v1006_v25  ;;  %v286_v43 = vpop.f32.mrf.mxu1  ;;  %1119 = vmatpush3.msra.mxu0 %v535_v57  ;;  %v85_v25 = vld [vmem:[%s1536_s2] sm:$0xff]  ;;  %v1281_v57 = vmov 0.0  }
  0xf1   :  { %v287_v49 = vadd.f32 %v286_v43, %v196_v40  ;;  %1120 = vmatprep.subr.mxu0 %v534_v58 }
  0xf2   :  { %1121 = vmatpush3.msra.mxu0 %v534_v58  ;;  %v301_v58 = vsub.s32 1, %v1423_v32 }
  0xf3   :  { %1142 = vmatprep.subr.mxu0 %v1281_v57 }
  0xf4   :  { %v302_v59 = vrot.slane %v1426_v38, %v301_v58 }
  0xf7   :  { %v1167_v26 = vpop.eup %1166 }
  0xf8   :  { %v414_v28 = vadd.f32 1.0, %v1167_v26 }
  0xf9   :  { %v1169_v29 = vpop.eup %1168 }
  0xfa   :  { %v413_v30 = vadd.f32 1.0, %v1169_v29  ;;  %1174 = vrcp.f32 %v414_v28 }
  0xfb   :  { %v1171_v31 = vpop.eup %1170 }
  0xfc   :  { %1176 = vrcp.f32 %v413_v30  ;;  %v416_v33 = vadd.f32 1.0, %v1171_v31 }
  0xfd   :  { %v1173_v34 = vpop.eup %1172 }
  0xfe   :  { %1178 = vrcp.f32 %v416_v33  ;;  %v415_v36 = vadd.f32 1.0, %v1173_v34  ;;  %v87_v34 = vld [vmem:[%s1536_s2 + $0x10] sm:$0xff] }
 0x100   :  { %1180 = vrcp.f32 %v415_v36  ;;  %v88_v36 = vld [vmem:[%s1536_s2 + $0x18] sm:$0xff] }
 0x107   :  { %v1175_v44 = vpop.eup %1174 }
 0x108   :  { %v426_v51 = vmul.f32 %v1175_v44, %v282_v42 }
 0x109   :  { %v1177_v46 = vpop.eup %1176 }
 0x10a   :  { %v425_v48 = vmul.f32 %v1177_v46, %v277_v45  ;;  %v540_v45 = vsub.s32 3, %v1423_v32 }
 0x10b   :  { %v1179_v50 = vpop.eup %1178 }
 0x10c   :  { %1108 = vmatprep.mubr.msk.f32.mxu1 %vm303_vm3, %v425_v48  ;;  %v428_v53 = vmul.f32 %v1179_v50, %v292_v47  ;;  %v541_v47 = vrot.slane %v1426_v38, %v540_v45 }
 0x10d   :  { %v1181_v52 = vpop.eup %1180  ;;  %1109 = vmatmul.mubr.msk.f32.vlgmr.msra.gmra.mxu1 %vm303_vm3, %v426_v51 }
 0x10e   :  { %v427_v54 = vmul.f32 %v1181_v52, %v287_v49  ;;  %1129 = vmatpush3.msra.mxu1 %v719_v10 }
 0x10f   :  { %1130 = vmatprep.subr.mxu1 %v718_v13 }
 0x110   :  { %1111 = vmatprep.mubr.msk.f32.mxu1 %vm303_vm3, %v427_v54  ;;  %1131 = vmatpush3.msra.mxu1 %v718_v13 }
 0x111   :  { %1112 = vmatmul.mubr.msk.f32.gmra.mxu1 %vm303_vm3, %v428_v53  ;;  %1132 = vmatprep.subr.mxu1 %v717_v15 }
 0x112   :  { %1133 = vmatpush3.msra.mxu1 %v717_v15 }
 0x113   :  { %1134 = vmatprep.subr.mxu1 %v716_v16 }
 0x114   :  { %1135 = vmatpush3.msra.mxu1 %v716_v16 }
 0x115   :  { %1149 = vmatprep.subr.mxu1 %v1281_v57 }
 0x1ab   :  { %v1096_v43 = vpop.f32.mrf.mxu0 }
 0x1ad   :  { %v382_v44 = vpop.f32.mrf.mxu0 }
 0x1af   :  { %v1099_v46 = vpop.f32.mrf.mxu0 }
 0x1b1   :  { %v392_v48 = vpop.f32.mrf.mxu0 }
 0x1cd   :  { %v1110_v61 = vpop.f32.mrf.mxu1 }
 0x1ce   :  { %v521_v62 = vadd.f32 %v1110_v61, %v436_v60 }
 0x1cf   :  { %v515_v63 = vpop.f32.mrf.mxu1 }
 0x1d0   :  { %v640_v0 = vmul.f32 0.5, %v521_v62  ;;  %v516_v1 = vadd.f32 %v515_v63, %v436_v60  ;;  %673 = vrot.lane.b32.xlu1 %v521_v62, %s1279_s30 }
 0x1d1   :  { %v1113_v2 = vpop.f32.mrf.mxu1 }
 0x1d2   :  { %v645_v3 = vmul.f32 1.442695, %v640_v0  ;;  %v639_v4 = vmul.f32 0.5, %v516_v1  ;;  %v531_v5 = vadd.f32 %v1113_v2, %v436_v60  ;;  %1122 = vmatprep.mubr.msk.f32.mxu0 %vm303_vm3, %v516_v1 }
 0x1d3   :  { %v525_v6 = vpop.f32.mrf.mxu1  ;;  %1123 = vmatmul.mubr.msk.f32.vlgmr.msra.gmra.mxu0 %vm303_vm3, %v521_v62  ;;  %v383_v62 = vadd.f32 %v382_v44, %v302_v59 }
 0x1d4   :  { %1182 = vpow2.f32 %v645_v3  ;;  %v643_v7 = vmul.f32 1.442695, %v639_v4  ;;  %v642_v8 = vmul.f32 0.5, %v531_v5  ;;  %v526_v9 = vadd.f32 %v525_v6, %v436_v60  ;;  %671 = vrot.lane.b32.xlu1 %v516_v1, %s1279_s30 }
 0x1d5   :  { %v388_v60 = vadd.f32 %v1096_v43, %v302_v59  ;;  %v398_v1 = vadd.f32 %v1099_v46, %v302_v59  ;;  %v393_v4 = vadd.f32 %v392_v48, %v302_v59 }
 0x1d6   :  { %v649_v11 = vmul.f32 1.442695, %v642_v8  ;;  %v641_v12 = vmul.f32 0.5, %v526_v9  ;;  %1125 = vmatprep.mubr.msk.f32.mxu0 %vm303_vm3, %v526_v9  ;;  %1184 = vpow2.f32 %v643_v7  ;;  %v722_v8 = vsub.s32 4, %v1423_v32 }
 0x1d7   :  { %1126 = vmatmul.mubr.msk.f32.gmra.mxu0 %vm303_vm3, %v531_v5 }
 0x1d8   :  { %1186 = vpow2.f32 %v649_v11  ;;  %v647_v14 = vmul.f32 1.442695, %v641_v12  ;;  %1146 = vmatprep.mubr.msk.f32.mxu0 %vm1282_vm5, %v1281_v57 }
 0x1da   :  { %1188 = vpow2.f32 %v647_v14  ;;  %v821_v14 = vld [vmem:[#allocation5] sm:$0xff] }
 0x1e1   :  { %v1183_v17 = vpop.eup %1182 }
 0x1e2   :  { %657 = vrot.lane.b32.xlu0 %v1183_v17, %s1280_s17 }
 0x1e3   :  { %v1185_v18 = vpop.eup %1184 }
 0x1e5   :  { %v1187_v19 = vpop.eup %1186 }
 0x1e6   :  { %661 = vrot.lane.b32.xlu1 %v1187_v19, %s1280_s17  ;;  %655 = vrot.lane.b32.xlu0 %v1185_v18, %s1280_s17 }
 0x1e7   :  { %v1189_v20 = vpop.eup %1188 }
 0x1ea   :  { %677 = vrot.lane.b32.xlu1 %v531_v5, %s1279_s30  ;;  %659 = vrot.lane.b32.xlu0 %v1189_v20, %s1280_s17 }
 0x1ee   :  { %675 = vrot.lane.b32.xlu0 %v526_v9, %s1279_s30  ;;  %v723_v9 = vrot.slane %v1426_v38, %v722_v8 }
 0x242   :  { %v674_v21 = vpop.permute.xlu1 %673 }
 0x243   :  { %711 = vst.msk [vmem:[%s1545_s11 + $0x18] sm:$0xff] %vm703_vm4, %v674_v21 }
 0x246   :  { %v672_v22 = vpop.permute.xlu1 %671 }
 0x247   :  { %709 = vst.msk [vmem:[%s1545_s11 + $0x8] sm:$0xff] %vm703_vm4, %v672_v22 }
 0x254   :  { %v658_v23 = vpop.permute.xlu0 %657 }
 0x255   :  { %v668_v26 = vmul.f32 %v658_v23, %v86_v24 }
 0x257   :  { %v684_v31 = vadd.f32 %v674_v21, %v668_v26 }
 0x258   :  { %v662_v27 = vpop.permute.xlu1 %661  ;;  %v656_v28 = vpop.permute.xlu0 %655 }
 0x259   :  { %v667_v29 = vmul.f32 %v656_v28, %v85_v25  ;;  %v670_v39 = vmul.f32 %v662_v27, %v88_v36 }
 0x25b   :  { %v683_v30 = vadd.f32 %v672_v22, %v667_v29 }
 0x25c   :  { %v678_v33 = vpop.permute.xlu1 %677  ;;  %v660_v35 = vpop.permute.xlu0 %659 }
 0x25d   :  { %715 = vst.msk [vmem:[%s1545_s11 + $0x38] sm:$0xff] %vm703_vm4, %v678_v33  ;;  %1136 = vmatprep.mubr.msk.f32.mxu1 %vm303_vm3, %v683_v30  ;;  %v669_v37 = vmul.f32 %v660_v35, %v87_v34  ;;  %v686_v42 = vadd.f32 %v678_v33, %v670_v39 }
 0x25e   :  { %1137 = vmatmul.mubr.msk.f32.vlgmr.msra.gmra.mxu1 %vm303_vm3, %v684_v31 }
 0x260   :  { %v676_v40 = vpop.permute.xlu0 %675 }
 0x261   :  { %v685_v41 = vadd.f32 %v676_v40, %v669_v37  ;;  %713 = vst.msk [vmem:[%s1545_s11 + $0x28] sm:$0xff] %vm703_vm4, %v676_v40 }
 0x263   :  { %1139 = vmatprep.mubr.msk.f32.mxu1 %vm303_vm3, %v685_v41 }
 0x264   :  { %1140 = vmatmul.mubr.msk.f32.gmra.mxu1 %vm303_vm3, %v686_v42 }
 0x265   :  { %1153 = vmatprep.mubr.msk.f32.mxu1 %vm1282_vm5, %v1281_v57 }
 0x293   :  { %v1124_v49 = vpop.f32.mrf.mxu0 }
 0x294   :  { %v626_v50 = vadd.f32 %v1124_v49, %v541_v47 }
 0x295   :  { %v620_v51 = vpop.f32.mrf.mxu0 }
 0x296   :  { %v621_v52 = vadd.f32 %v620_v51, %v541_v47  ;;  %693 = vrot.lane.b32.xlu1 %v626_v50, %s1280_s17 }
 0x297   :  { %v1127_v53 = vpop.f32.mrf.mxu0 }
 0x298   :  { %v636_v54 = vadd.f32 %v1127_v53, %v541_v47  ;;  %691 = vrot.lane.b32.xlu0 %v621_v52, %s1280_s17 }
 0x299   :  { %v630_v55 = vpop.f32.mrf.mxu0 }
 0x29a   :  { %v631_v56 = vadd.f32 %v630_v55, %v541_v47  ;;  %697 = vrot.lane.b32.xlu1 %v636_v54, %s1280_s17 }
 0x29c   :  { %695 = vrot.lane.b32.xlu0 %v631_v56, %s1280_s17 }
 0x308   :  { %v694_v61 = vpop.permute.xlu1 %693 }
 0x309   :  { %v705_v63 = vsel %vm703_vm4, %v388_v60, %v694_v61 }
 0x30a   :  { %710 = vst [vmem:[%s1545_s11 + $0x10] sm:$0xff] %v705_v63  ;;  %v692_v0 = vpop.permute.xlu0 %691 }
 0x30b   :  { %v704_v2 = vsel %vm703_vm4, %v383_v62, %v692_v0 }
 0x30c   :  { %708 = vst [vmem:[%s1545_s11] sm:$0xff] %v704_v2  ;;  %v698_v3 = vpop.permute.xlu1 %697 }
 0x30d   :  { %v707_v5 = vsel %vm703_vm4, %v398_v1, %v698_v3 }
 0x30e   :  { %714 = vst [vmem:[%s1545_s11 + $0x30] sm:$0xff] %v707_v5  ;;  %v696_v6 = vpop.permute.xlu0 %695 }
 0x30f   :  { %v706_v7 = vsel %vm703_vm4, %v393_v4, %v696_v6 }
 0x310   :  { %712 = vst [vmem:[%s1545_s11 + $0x20] sm:$0xff] %v706_v7  ;;  %s1283_s11 = smov [#allocation8]  }
 0x311   :  { %s976_s9 = sshll.u32 %s1283_s11, 4  ;;  %s977_s9 = int_to_ptr.vmem [resolvable:$true] %s976_s9 }
 0x312   :  { %s1250_s16 = scalar_lea.vmem %s977_s9, 256  ;;  %p1255_p2 = scmp.lt.s32.totalorder %s977_s9, %s977_s9 }
 0x313   :  { %p1251_p1 = scmp.ne.s32.totalorder %s977_s9, %s1250_s16  ;;  %p1256_p3 = scmp.lt.s32.totalorder %s1250_s16, %s1250_s16 }
 0x315   :  { %p1257_p4 = por %p1256_p3, %p1255_p2 }
 0x317   :  { %p1258_p5 = pnand %p1257_p4, %p1251_p1 }
 0x31e   :  { %v1138_v10 = vpop.f32.mrf.mxu1 }
 0x31f   :  { %v808_v11 = vadd.f32 %v1138_v10, %v723_v9 }
 0x320   :  { %v802_v12 = vpop.f32.mrf.mxu1 }
 0x321   :  { %v803_v13 = vadd.f32 %v802_v12, %v723_v9  ;;  %1143 = vmatpush3.msra.mxu0 %v808_v11 }
 0x322   :  { %1144 = vmatprep.subr.mxu0 %v1281_v57 }
 0x323   :  { %1145 = vmatpush3.msra.mxu0 %v803_v13 }
 0x324   :  { %v1141_v15 = vpop.f32.mrf.mxu1  ;;  %1147 = vmatmul.mubr.msk.f32.vlgmr.msra.gmra.mxu0 %vm822_vm6, %v821_v14 }
 0x325   :  { %v818_v16 = vadd.f32 %v1141_v15, %v723_v9 }
 0x326   :  { %v812_v17 = vpop.f32.mrf.mxu1 }
 0x327   :  { %v813_v18 = vadd.f32 %v812_v17, %v723_v9  ;;  %1150 = vmatpush3.msra.mxu1 %v818_v16 }
 0x328   :  { %1151 = vmatprep.subr.mxu1 %v1281_v57 }
 0x329   :  { %1152 = vmatpush3.msra.mxu1 %v813_v18 }
 0x32a   :  { %1154 = vmatmul.mubr.msk.f32.vlgmr.msra.gmra.mxu1 %vm822_vm6, %v821_v14 }
 0x3e4   :  { %v892_v32 = vpop.f32.mrf.mxu0 }
 0x3e5   :  { %896 = vst.msk [vmem:[#allocation8] sm:$0xff] %vm197_vm2, %v892_v32 }
 0x3e6   :  { %v1148_v38 = vpop.f32.mrf.mxu0 }
 0x3ea   :  { %v963_v19 = vpop.f32.mrf.mxu1 }
 0x3eb   :  { %968 = vst.msk [vmem:[#allocation8 + $0x8] sm:$0xff] %vm197_vm2, %v963_v19 }
 0x3ec   :  { %v1155_v20 = vpop.f32.mrf.mxu1 }
 0x3ed   :  { %1261 = shalt.err (!%p1258_p5)
}
 0x3ee   :  { %s1284_s1 = smov 128   ;;  %s1285_s4 = smov 8  }
 0x3ef   :  { %982 = dma.vmem_to_hbm [thread:$0]  %s977_s9, 256, %s1546_s12, [#allocation4], %s1284_s1, %s1284_s1, %s1285_s4  }
 0x3f0   :  { %1274 = dma.done.wait [#allocation4], 256  }
 0x3f1   :  { %1275 = vsyncadd [#allocation4], 4294967040 }
 0x3f2   :  { %988 = vsyncpa [#allocation3], 1 }
 0x3f3   :  { %989 = vsyncpa [#allocation6], 1 }
 0x3f4   :  { %990 = vsyncpa [#allocation4], 1 }

</bundles_post_ra>
